<compile_context>
chip_gen: v7x
topology: tpu7x:2x2x1
jax: 0.10.0
libtpu: 0.0.40
codegen_flags: <defaults>
</compile_context>

<pallas_src>
import jax
import jax.numpy as jnp
from jax.experimental import pallas as pl
from jax.experimental.pallas import tpu as pltpu

NEG_INF = jnp.float32(-1e30)             # "minus infinity" for padded class logits
_W1_RESIDENT_BYTES = 12 * 1024 * 1024    # keep W1 VMEM-resident up to ~49k genes (bf16)
_VMEM_LIMIT_BYTES = 48 * 1024 * 1024     # safe on v7x (64 MiB physical VMEM)


def _round_up(n, m):
    return ((n + m - 1) // m) * m


def _device_kind():
    try:
        return jax.devices()[0].device_kind.lower()
    except Exception:  # pragma: no cover
        return ""


def _make_kernel(tk, w1_resident):
    """Kernel factory; `tk` / `w1_resident` are compile-time Python values."""

    def kernel(x_ref, w1_ref, b1_ref, w2_ref, b2_ref, w3_ref, b3_ref, o_ref, acc_ref):
        k = pl.program_id(1)

        # ---- layer-1 partial matmul, accumulated over the K (gene) axis -----
        @pl.when(k == 0)
        def _():
            acc_ref[...] = jnp.zeros_like(acc_ref)

        if w1_resident:
            # W1 lives whole in VMEM (loaded once); slice the K block in-place.
            start = pl.multiple_of(k * tk, 128)
            w1_blk = w1_ref[pl.ds(start, tk), :]
        else:
            w1_blk = w1_ref[...]

        acc_ref[...] += jnp.dot(x_ref[...], w1_blk,
                                preferred_element_type=jnp.float32)

        # ---- epilogue: bias/ReLU, layers 2 & 3, log-softmax ------------------
        @pl.when(k == pl.num_programs(1) - 1)
        def _():
            h1 = jnp.maximum(acc_ref[...] + b1_ref[...], 0.0)             # f32
            h2 = jnp.dot(h1.astype(w2_ref.dtype), w2_ref[...],
                         preferred_element_type=jnp.float32)
            h2 = jnp.maximum(h2 + b2_ref[...], 0.0)                        # f32
            logits = jnp.dot(h2.astype(w3_ref.dtype), w3_ref[...],
                             preferred_element_type=jnp.float32)
            logits = logits + b3_ref[...]                                  # f32

            # numerically-stable log-softmax over lane-dense padded classes
            m = jnp.max(logits, axis=-1, keepdims=True)
            z = logits - m
            lse = jnp.log(jnp.sum(jnp.exp(z), axis=-1, keepdims=True))
            o_ref[...] = z - lse

    return kernel


def prepare_params(params, *, max_tile_k=8192):
    """One-time padding + bf16 cast of weights (kept OFF the per-call hot path).

    params: dict with (in,out) weights 'w1','w2','w3' and (1,out) biases.
    """
    w1 = jnp.asarray(params["w1"], jnp.float32)
    b1 = jnp.asarray(params["b1"], jnp.float32).reshape(1, -1)
    w2 = jnp.asarray(params["w2"], jnp.float32)
    b2 = jnp.asarray(params["b2"], jnp.float32).reshape(1, -1)
    w3 = jnp.asarray(params["w3"], jnp.float32)
    b3 = jnp.asarray(params["b3"], jnp.float32).reshape(1, -1)

    G, H1 = w1.shape
    H2, C = w3.shape

    # K tiling: TK multiple of 128, nk steps, Gp = TK*nk with minimal overshoot.
    g128 = _round_up(G, 128)
    nb = g128 // 128
    cap_blocks = max(1, max_tile_k // 128)
    nk = -(-nb // cap_blocks)
    tk = (-(-nb // nk)) * 128
    gp = tk * nk

    h1p = _round_up(H1, 128)
    h2p = _round_up(H2, 128)
    cp = _round_up(C, 128)

    bf16, f32 = jnp.bfloat16, jnp.float32
    w1p = jnp.zeros((gp, h1p), bf16).at[:G, :H1].set(w1.astype(bf16))
    b1p = jnp.zeros((1, h1p), f32).at[:, :H1].set(b1)
    w2p = jnp.zeros((h1p, h2p), bf16).at[:H1, :H2].set(w2.astype(bf16))
    b2p = jnp.zeros((1, h2p), f32).at[:, :H2].set(b2)
    w3p = jnp.zeros((h2p, cp), bf16).at[:H2, :C].set(w3.astype(bf16))
    # padded classes get a huge negative bias -> exp() contributes 0
    b3p = jnp.full((1, cp), NEG_INF, f32).at[:, :C].set(b3)

    return {
        "w1": w1p, "b1": b1p, "w2": w2p, "b2": b2p, "w3": w3p, "b3": b3p,
        "num_genes": G, "num_classes": C, "gp": gp, "tk": tk, "nk": nk,
    }


def simple_forward(x, prep, *, tile_batch=None):
    """x: (batch, num_genes). prep: output of prepare_params. Returns log-probs."""
    G, C = prep["num_genes"], prep["num_classes"]
    gp, tk, nk = prep["gp"], prep["tk"], prep["nk"]
    w1p, b1p = prep["w1"], prep["b1"]
    w2p, b2p = prep["w2"], prep["b2"]
    w3p, b3p = prep["w3"], prep["b3"]
    h1p, h2p, cp = w1p.shape[1], w2p.shape[1], w3p.shape[1]

    B = x.shape[0]
    assert x.shape[1] == G

    # ---- chip-aware batch tile (multiple of 16 for bf16 sublane packing) ----
    kind = _device_kind()
    auto_tb = tile_batch is None
    if auto_tb:
        tile_batch = 128 if "v5" in kind else 256
    tb = min(_round_up(tile_batch, 16), _round_up(B, 16))
    # v7x has 2 TensorCores: give the "parallel" batch axis >=2 tiles when possible.
    if auto_tb and "v7" in kind and B >= 32:
        tb = min(tb, _round_up(-(-B // 2), 16))
    bp = _round_up(B, tb)

    # ---- x: cast to bf16; pad only when the shape actually requires it ------
    xb = x.astype(jnp.bfloat16)
    if B != bp or G != gp:
        xp = jnp.zeros((bp, gp), jnp.bfloat16).at[:B, :G].set(xb)
    else:
        xp = xb

    # ---- W1 residency: load the whole (Gp, 128) weight into VMEM once -------
    w1_resident = (w1p.size * 2) <= _W1_RESIDENT_BYTES
    if w1_resident:
        w1_spec = pl.BlockSpec((gp, h1p), lambda i, k: (0, 0))
    else:
        # TODO(synk): extremely large gene panels fall back to streaming W1 per
        # K tile (re-read once per batch tile).
        w1_spec = pl.BlockSpec((tk, h1p), lambda i, k: (k, 0))

    grid = (bp // tb, nk)

    cost = pl.CostEstimate(
        flops=2 * bp * (gp * h1p + h1p * h2p + h2p * cp),
        transcendentals=bp * cp,
        bytes_accessed=(2 * (bp * gp + gp * h1p + h1p * h2p + h2p * cp)   # bf16 streams
                        + 4 * (bp * cp + h1p + h2p + cp)),                # f32 out + biases
    )

    out = pl.pallas_call(
        _make_kernel(tk, w1_resident),
        out_shape=jax.ShapeDtypeStruct((bp, cp), jnp.float32),
        grid_spec=pltpu.PrefetchScalarGridSpec(
            num_scalar_prefetch=0,
            grid=grid,
            in_specs=[
                pl.BlockSpec((tb, tk), lambda i, k: (i, k)),     # x (streamed once)
                w1_spec,                                         # W1 (VMEM-resident)
                pl.BlockSpec((1, h1p), lambda i, k: (0, 0)),     # b1 (resident)
                pl.BlockSpec((h1p, h2p), lambda i, k: (0, 0)),   # W2 (resident)
                pl.BlockSpec((1, h2p), lambda i, k: (0, 0)),     # b2 (resident)
                pl.BlockSpec((h2p, cp), lambda i, k: (0, 0)),    # W3 (resident)
                pl.BlockSpec((1, cp), lambda i, k: (0, 0)),      # b3 (resident)
            ],
            out_specs=pl.BlockSpec((tb, cp), lambda i, k: (i, 0)),
            scratch_shapes=[pltpu.VMEM((tb, h1p), jnp.float32)],
        ),
        compiler_params=pltpu.CompilerParams(
            dimension_semantics=("parallel", "arbitrary"),
            vmem_limit_bytes=_VMEM_LIMIT_BYTES,
        ),
        cost_estimate=cost,
    )(xp, w1p, b1p, w2p, b2p, w3p, b3p)

    return out[:B, :C]


def init_params(key, num_genes, num_classes, hidden_dim1=128, hidden_dim2=64):
    """Kaiming-normal (fan_in, relu) weights, zero biases — matches _init_weights."""
    k1, k2, k3 = jax.random.split(key, 3)

    def kaiming(k, fan_in, fan_out):
        std = (2.0 / fan_in) ** 0.5
        # stored as (in, out) == transpose of PyTorch's (out, in) weight
        return std * jax.random.normal(k, (fan_in, fan_out), dtype=jnp.float32)

    return {
        "w1": kaiming(k1, num_genes, hidden_dim1),
        "b1": jnp.zeros((1, hidden_dim1), jnp.float32),
        "w2": kaiming(k2, hidden_dim1, hidden_dim2),
        "b2": jnp.zeros((1, hidden_dim2), jnp.float32),
        "w3": kaiming(k3, hidden_dim2, num_classes),
        "b3": jnp.zeros((1, num_classes), jnp.float32),
    }


def reference_forward(x, params, matmul_dtype=jnp.float32):
    """Pure-JAX reference; matmul_dtype=bf16 mirrors the kernel's operand precision."""
    c = lambda a: a.astype(matmul_dtype)
    h1 = jnp.maximum(jnp.dot(c(x), c(params["w1"]),
                             preferred_element_type=jnp.float32) + params["b1"], 0.0)
    h2 = jnp.maximum(jnp.dot(c(h1), c(params["w2"]),
                             preferred_element_type=jnp.float32) + params["b2"], 0.0)
    logits = jnp.dot(c(h2), c(params["w3"]),
                     preferred_element_type=jnp.float32) + params["b3"]
    return jax.nn.log_softmax(logits, axis=1)


if __name__ == "__main__":
    key = jax.random.PRNGKey(0)

    # --- case 1: small deterministic example (batch=2, genes=32, classes=10) --
    kx, kp, key = jax.random.split(key, 3)
    batch, num_genes, num_classes = 2, 32, 10
    x = jax.random.normal(kx, (batch, num_genes), dtype=jnp.float32)
    params = init_params(kp, num_genes, num_classes)
    prep = prepare_params(params)          # pad/cast ONCE, off the per-call path

    # TODO(synk): Dropout(0.3) is a no-op at inference; training-mode stochastic
    # masking (pltpu.prng_random_bits) intentionally not implemented.
    out = jax.block_until_ready(simple_forward(x, prep))
    assert out.shape == (batch, num_classes)
    ref_bf16 = reference_forward(x, params, jnp.bfloat16)   # matched matmul precision
    ref_f32 = reference_forward(x, params)
    assert jnp.allclose(out, ref_bf16, atol=5e-3, rtol=5e-3), "mismatch vs bf16 reference (case 1)"
    assert jnp.allclose(out, ref_f32, atol=7.5e-2, rtol=7.5e-2), "mismatch vs f32 reference (case 1)"
    assert jnp.allclose(jnp.exp(out).sum(axis=1), 1.0, atol=1e-4)

    # --- case 2: exercises batch tiling, padding, multi-step K accumulation ---
    kx2, kp2 = jax.random.split(key)
    batch2, num_genes2 = 20, 300                      # pads to (32, 384)
    x2 = jax.random.normal(kx2, (batch2, num_genes2), dtype=jnp.float32)
    params2 = init_params(kp2, num_genes2, num_classes)
    prep2 = prepare_params(params2, max_tile_k=128)   # 3 K-tiles of 128
    out2 = jax.block_until_ready(simple_forward(x2, prep2, tile_batch=16))  # 2 batch tiles
    assert out2.shape == (batch2, num_classes)
    ref2_bf16 = reference_forward(x2, params2, jnp.bfloat16)
    ref2_f32 = reference_forward(x2, params2)
    assert jnp.allclose(out2, ref2_bf16, atol=5e-3, rtol=5e-3), "mismatch vs bf16 reference (case 2)"
    assert jnp.allclose(out2, ref2_f32, atol=7.5e-2, rtol=7.5e-2), "mismatch vs f32 reference (case 2)"
    assert jnp.allclose(jnp.exp(out2).sum(axis=1), 1.0, atol=1e-4)

    print("KERNEL_OK")
</pallas_src>

<mosaic_0001>
module attributes {stable_mosaic.version = 11 : i64} {
  func.func @kernel(%arg0: i32, %arg1: i32, %arg2: memref<16x128xbf16, #tpu.memory_space<vmem>>, %arg3: memref<128x128xbf16, #tpu.memory_space<vmem>>, %arg4: memref<1x128xf32, #tpu.memory_space<vmem>>, %arg5: memref<128x128xbf16, #tpu.memory_space<vmem>>, %arg6: memref<1x128xf32, #tpu.memory_space<vmem>>, %arg7: memref<128x128xbf16, #tpu.memory_space<vmem>>, %arg8: memref<1x128xf32, #tpu.memory_space<vmem>>, %arg9: memref<16x128xf32, #tpu.memory_space<vmem>>, %arg10: memref<16x128xf32, #tpu.memory_space<vmem>>) attributes {dimension_semantics = [#tpu.dimension_semantics<parallel>, #tpu.dimension_semantics<arbitrary>], iteration_bounds = array<i64: 1, 1>, scalar_prefetch = 0 : i64, scratch_operands = 1 : i64, tpu.core_type = #tpu.core_type<tc>, window_params = [{transform_indices = @transform_0, window_bounds = array<i64: 16, 128>}, {pipeline_mode = #tpu.pipeline_mode<synchronous>, transform_indices = @transform_1, window_bounds = array<i64: 128, 128>}, {pipeline_mode = #tpu.pipeline_mode<synchronous>, transform_indices = @transform_2, window_bounds = array<i64: 1, 128>}, {pipeline_mode = #tpu.pipeline_mode<synchronous>, transform_indices = @transform_3, window_bounds = array<i64: 128, 128>}, {pipeline_mode = #tpu.pipeline_mode<synchronous>, transform_indices = @transform_4, window_bounds = array<i64: 1, 128>}, {pipeline_mode = #tpu.pipeline_mode<synchronous>, transform_indices = @transform_5, window_bounds = array<i64: 128, 128>}, {pipeline_mode = #tpu.pipeline_mode<synchronous>, transform_indices = @transform_6, window_bounds = array<i64: 1, 128>}, {transform_indices = @transform_7, window_bounds = array<i64: 16, 128>}]} {
    %c0_i32 = arith.constant 0 : i32
    %0 = arith.cmpi eq, %arg1, %c0_i32 : i32
    %1 = arith.extui %0 : i1 to i32
    %c0_i32_0 = arith.constant 0 : i32
    %2 = arith.cmpi ne, %1, %c0_i32_0 : i32
    scf.if %2 {
      %cst_9 = arith.constant 0.000000e+00 : f32
      %15 = vector.broadcast %cst_9 : f32 to vector<16x128xf32>
      %c0_10 = arith.constant 0 : index
      %c0_11 = arith.constant 0 : index
      %16 = vector.load %arg10[%c0_10, %c0_11] : memref<16x128xf32, #tpu.memory_space<vmem>>, vector<16x128xf32>
      tpu.vector_store %arg10[%c0_10, %c0_11], %15 {strides = array<i32>} : memref<16x128xf32, #tpu.memory_space<vmem>>, vector<16x128xf32>,
    } else {
    }
    %c128_i32 = arith.constant 128 : i32
    %3 = arith.muli %arg1, %c128_i32 : i32
    %4 = tpu.assume_multiple %3, 128 : i32
    %5 = arith.index_cast %4 : i32 to index
    %c0 = arith.constant 0 : index
    %6 = vector.load %arg3[%5, %c0] : memref<128x128xbf16, #tpu.memory_space<vmem>>, vector<128x128xbf16>
    %c0_1 = arith.constant 0 : index
    %c0_2 = arith.constant 0 : index
    %7 = vector.load %arg10[%c0_1, %c0_2] : memref<16x128xf32, #tpu.memory_space<vmem>>, vector<16x128xf32>
    %c0_3 = arith.constant 0 : index
    %c0_4 = arith.constant 0 : index
    %8 = vector.load %arg2[%c0_3, %c0_4] : memref<16x128xbf16, #tpu.memory_space<vmem>>, vector<16x128xbf16>
    %cst = arith.constant dense<0.000000e+00> : vector<16x128xf32>
    %9 = tpu.matmul %8, %6, %cst {dimension_numbers = #tpu.dot_dimension_numbers<[1], [0], [0], [1], [0, 0, 1, 1], [], []>} : vector<16x128xbf16>, vector<128x128xbf16>, vector<16x128xf32> -> vector<16x128xf32>
    %10 = arith.addf %7, %9 : vector<16x128xf32>
    %c0_5 = arith.constant 0 : index
    %c0_6 = arith.constant 0 : index
    %11 = vector.load %arg10[%c0_5, %c0_6] : memref<16x128xf32, #tpu.memory_space<vmem>>, vector<16x128xf32>
    tpu.vector_store %arg10[%c0_5, %c0_6], %10 {strides = array<i32>} : memref<16x128xf32, #tpu.memory_space<vmem>>, vector<16x128xf32>,
    %c0_i32_7 = arith.constant 0 : i32
    %12 = arith.cmpi eq, %arg1, %c0_i32_7 : i32
    %13 = arith.extui %12 : i1 to i32
    %c0_i32_8 = arith.constant 0 : i32
    %14 = arith.cmpi ne, %13, %c0_i32_8 : i32
    scf.if %14 {
      %c0_9 = arith.constant 0 : index
      %c0_10 = arith.constant 0 : index
      %15 = vector.load %arg10[%c0_9, %c0_10] : memref<16x128xf32, #tpu.memory_space<vmem>>, vector<16x128xf32>
      %c0_11 = arith.constant 0 : index
      %c0_12 = arith.constant 0 : index
      %16 = vector.load %arg4[%c0_11, %c0_12] : memref<1x128xf32, #tpu.memory_space<vmem>>, vector<1x128xf32>
      %17 = vector.broadcast %16 : vector<1x128xf32> to vector<16x128xf32>
      %18 = arith.addf %15, %17 : vector<16x128xf32>
      %cst_13 = arith.constant 0.000000e+00 : f32
      %19 = vector.broadcast %cst_13 : f32 to vector<16x128xf32>
      %20 = arith.maximumf %18, %19 : vector<16x128xf32>
      %21 = arith.truncf %20 : vector<16x128xf32> to vector<16x128xbf16>
      %c0_14 = arith.constant 0 : index
      %c0_15 = arith.constant 0 : index
      %22 = vector.load %arg5[%c0_14, %c0_15] : memref<128x128xbf16, #tpu.memory_space<vmem>>, vector<128x128xbf16>
      %cst_16 = arith.constant dense<0.000000e+00> : vector<16x128xf32>
      %23 = tpu.matmul %21, %22, %cst_16 {dimension_numbers = #tpu.dot_dimension_numbers<[1], [0], [0], [1], [0, 0, 1, 1], [], []>} : vector<16x128xbf16>, vector<128x128xbf16>, vector<16x128xf32> -> vector<16x128xf32>
      %c0_17 = arith.constant 0 : index
      %c0_18 = arith.constant 0 : index
      %24 = vector.load %arg6[%c0_17, %c0_18] : memref<1x128xf32, #tpu.memory_space<vmem>>, vector<1x128xf32>
      %25 = vector.broadcast %24 : vector<1x128xf32> to vector<16x128xf32>
      %26 = arith.addf %23, %25 : vector<16x128xf32>
      %cst_19 = arith.constant 0.000000e+00 : f32
      %27 = vector.broadcast %cst_19 : f32 to vector<16x128xf32>
      %28 = arith.maximumf %26, %27 : vector<16x128xf32>
      %29 = arith.truncf %28 : vector<16x128xf32> to vector<16x128xbf16>
      %c0_20 = arith.constant 0 : index
      %c0_21 = arith.constant 0 : index
      %30 = vector.load %arg7[%c0_20, %c0_21] : memref<128x128xbf16, #tpu.memory_space<vmem>>, vector<128x128xbf16>
      %cst_22 = arith.constant dense<0.000000e+00> : vector<16x128xf32>
      %31 = tpu.matmul %29, %30, %cst_22 {dimension_numbers = #tpu.dot_dimension_numbers<[1], [0], [0], [1], [0, 0, 1, 1], [], []>} : vector<16x128xbf16>, vector<128x128xbf16>, vector<16x128xf32> -> vector<16x128xf32>
      %c0_23 = arith.constant 0 : index
      %c0_24 = arith.constant 0 : index
      %32 = vector.load %arg8[%c0_23, %c0_24] : memref<1x128xf32, #tpu.memory_space<vmem>>, vector<1x128xf32>
      %33 = vector.broadcast %32 : vector<1x128xf32> to vector<16x128xf32>
      %34 = arith.addf %31, %33 : vector<16x128xf32>
      %cst_25 = arith.constant dense<0xFF800000> : vector<16xf32>
      %35 = vector.multi_reduction <maximumf>, %34, %cst_25 [1] : vector<16x128xf32> to vector<16xf32>
      %36 = vector.shape_cast %35 : vector<16xf32> to vector<16x1xf32>
      %37 = vector.broadcast %36 : vector<16x1xf32> to vector<16x128xf32>
      %38 = arith.subf %34, %37 : vector<16x128xf32>
      %39 = math.exp %38 : vector<16x128xf32>
      %cst_26 = arith.constant dense<0.000000e+00> : vector<16xf32>
      %40 = vector.multi_reduction <add>, %39, %cst_26 [1] : vector<16x128xf32> to vector<16xf32>
      %41 = vector.shape_cast %40 : vector<16xf32> to vector<16x1xf32>
      %42 = math.log %41 : vector<16x1xf32>
      %43 = vector.broadcast %42 : vector<16x1xf32> to vector<16x128xf32>
      %44 = arith.subf %38, %43 : vector<16x128xf32>
      %c0_27 = arith.constant 0 : index
      %c0_28 = arith.constant 0 : index
      %45 = vector.load %arg9[%c0_27, %c0_28] : memref<16x128xf32, #tpu.memory_space<vmem>>, vector<16x128xf32>
      tpu.vector_store %arg9[%c0_27, %c0_28], %44 {strides = array<i32>} : memref<16x128xf32, #tpu.memory_space<vmem>>, vector<16x128xf32>,
    } else {
    }
    return
  }
  func.func @transform_0(%arg0: i32, %arg1: i32) -> (i32, i32) {
    %c0_i32 = arith.constant 0 : i32
    return %arg0, %arg1 : i32, i32
  }
  func.func @transform_1(%arg0: i32, %arg1: i32) -> (i32, i32) {
    %c0_i32 = arith.constant 0 : i32
    %c0_i32_0 = arith.constant 0 : i32
    %c0_i32_1 = arith.constant 0 : i32
    return %c0_i32, %c0_i32_0 : i32, i32
  }
  func.func @transform_2(%arg0: i32, %arg1: i32) -> (i32, i32) {
    %c0_i32 = arith.constant 0 : i32
    %c0_i32_0 = arith.constant 0 : i32
    %c0_i32_1 = arith.constant 0 : i32
    return %c0_i32, %c0_i32_0 : i32, i32
  }
  func.func @transform_3(%arg0: i32, %arg1: i32) -> (i32, i32) {
    %c0_i32 = arith.constant 0 : i32
    %c0_i32_0 = arith.constant 0 : i32
    %c0_i32_1 = arith.constant 0 : i32
    return %c0_i32, %c0_i32_0 : i32, i32
  }
  func.func @transform_4(%arg0: i32, %arg1: i32) -> (i32, i32) {
    %c0_i32 = arith.constant 0 : i32
    %c0_i32_0 = arith.constant 0 : i32
    %c0_i32_1 = arith.constant 0 : i32
    return %c0_i32, %c0_i32_0 : i32, i32
  }
  func.func @transform_5(%arg0: i32, %arg1: i32) -> (i32, i32) {
    %c0_i32 = arith.constant 0 : i32
    %c0_i32_0 = arith.constant 0 : i32
    %c0_i32_1 = arith.constant 0 : i32
    return %c0_i32, %c0_i32_0 : i32, i32
  }
  func.func @transform_6(%arg0: i32, %arg1: i32) -> (i32, i32) {
    %c0_i32 = arith.constant 0 : i32
    %c0_i32_0 = arith.constant 0 : i32
    %c0_i32_1 = arith.constant 0 : i32
    return %c0_i32, %c0_i32_0 : i32, i32
  }
  func.func @transform_7(%arg0: i32, %arg1: i32) -> (i32, i32) {
    %c0_i32 = arith.constant 0 : i32
    %c0_i32_0 = arith.constant 0 : i32
    return %arg0, %c0_i32 : i32, i32
  }
}

</mosaic_0001>

<bundles_post_ra>
// kernel: tpu_custom_call.1
= control target key start
LH: loop header
LB: loop body
LE: loop exit
PB: predicated region body
PF: predicated region fallthrough
CT: control target
= control target key end

     0   :  { %12 = vsyncpa [#allocation4], 0  ;;  %s953_s0 = inlined_call_operand.hbm [shape: bf16[16,128], index: 0, kind: input, shape index: {}]   ;;  %s954_s1 = inlined_call_operand.hbm [shape: bf16[128,128], index: 1, kind: input, shape index: {}]   ;;  %s955_s2 = inlined_call_operand.vmem [shape: f32[1,128], index: 2, kind: input, shape index: {}]   ;;  %s956_s3 = inlined_call_operand.hbm [shape: bf16[128,128], index: 3, kind: input, shape index: {}]   ;;  %s957_s4 = inlined_call_operand.vmem [shape: f32[1,128], index: 4, kind: input, shape index: {}]   ;;  %s958_s5 = inlined_call_operand.hbm [shape: bf16[128,128], index: 5, kind: input, shape index: {}]   ;;  %s959_s6 = inlined_call_operand.vmem [shape: f32[1,128], index: 6, kind: input, shape index: {}]   ;;  %s960_s7 = inlined_call_operand.hbm [shape: f32[16,128], index: 7, kind: output, shape index: {}]  }
   0x1   :  { %13 = vsyncpa [#allocation7], 0 }
   0x2   :  { %14 = vsyncpa [#allocation10], 0 }
   0x3   :  { %15 = vsyncpa [#allocation5], 0  ;;  %s777_s24 = smov [#allocation6]   ;;  %s778_s26 = smov [#allocation3]  }
   0x4   :  { %s33_s25 = sshll.u32 %s777_s24, 4  ;;  %s21_s27 = sshll.u32 %s778_s26, 4  ;;  %s34_s25 = int_to_ptr.vmem [resolvable:$true] %s33_s25  ;;  %s828_s27 = int_to_ptr.vmem [resolvable:$true] %s21_s27 }
   0x5   :  { %s659_s30 = scalar_lea.hbm %s954_s1, 1024 }
   0x6   :  { %p660_p0 = scmp.ne.s32.totalorder %s954_s1, %s659_s30  ;;  %p663_p1 = scmp.lt.u32.totalorder %s659_s30, %s954_s1 }
   0x8   :  { %p665_p2 = pnand %p663_p1, %p660_p0 }
   0xa   :  { %668 = shalt.err (!%p665_p2)
}
   0xb   :  { %s669_s12 = scalar_lea.vmem %s34_s25, 1024  ;;  %p674_p4 = scmp.lt.s32.totalorder %s34_s25, %s34_s25 }
   0xc   :  { %p670_p3 = scmp.ne.s32.totalorder %s34_s25, %s669_s12  ;;  %p675_p5 = scmp.lt.s32.totalorder %s669_s12, %s669_s12 }
   0xe   :  { %p676_p6 = por %p675_p5, %p674_p4 }
  0x10   :  { %p677_p7 = pnand %p676_p6, %p670_p3 }
  0x12   :  { %680 = shalt.err (!%p677_p7)
}
  0x13   :  { %s779_s13 = smov 64   ;;  %s780_s14 = smov 4  }
  0x14   :  { %39 = dma.hbm_to_vmem [thread:$0]  %s954_s1, 1024, %s34_s25, [#allocation7], %s779_s13, %s779_s13, %s780_s14  }
  0x15   :  { %s681_s19 = scalar_lea.hbm %s953_s0, 128 }
  0x16   :  { %p682_p8 = scmp.ne.s32.totalorder %s953_s0, %s681_s19  ;;  %p685_p9 = scmp.lt.u32.totalorder %s681_s19, %s953_s0 }
  0x18   :  { %p687_p10 = pnand %p685_p9, %p682_p8 }
  0x1a   :  { %690 = shalt.err (!%p687_p10)
}
  0x1b   :  { %s691_s24 = scalar_lea.vmem %s828_s27, 128  ;;  %p696_p12 = scmp.lt.s32.totalorder %s828_s27, %s828_s27 }
  0x1c   :  { %p692_p11 = scmp.ne.s32.totalorder %s828_s27, %s691_s24  ;;  %p697_p13 = scmp.lt.s32.totalorder %s691_s24, %s691_s24 }
  0x1e   :  { %p698_p0 = por %p697_p13, %p696_p12 }
  0x20   :  { %p699_p1 = pnand %p698_p0, %p692_p11 }
  0x22   :  { %702 = shalt.err (!%p699_p1)
}
  0x23   :  { %27 = dma.hbm_to_vmem [thread:$0]  %s953_s0, 128, %s828_s27, [#allocation4], %s779_s13, %s779_s13, %s780_s14  }
  0x24   :  { %s781_s26 = smov [#allocation8]   ;;  %s782_s29 = smov [#allocation9]  }
  0x25   :  { %s47_s28 = sshll.u32 %s781_s26, 4  ;;  %s61_s30 = sshll.u32 %s782_s29, 4  ;;  %s48_s28 = int_to_ptr.vmem [resolvable:$true] %s47_s28  ;;  %s865_s30 = int_to_ptr.vmem [resolvable:$true] %s61_s30 }
  0x26   :  { %s703_s10 = scalar_lea.hbm %s956_s3, 1024 }
  0x27   :  { %p704_p2 = scmp.ne.s32.totalorder %s956_s3, %s703_s10  ;;  %p707_p3 = scmp.lt.u32.totalorder %s703_s10, %s956_s3 }
  0x29   :  { %p709_p4 = pnand %p707_p3, %p704_p2 }
  0x2b   :  { %712 = shalt.err (!%p709_p4)
}
  0x2c   :  { %s713_s0 = scalar_lea.vmem %s48_s28, 1024  ;;  %p718_p6 = scmp.lt.s32.totalorder %s48_s28, %s48_s28 }
  0x2d   :  { %p714_p5 = scmp.ne.s32.totalorder %s48_s28, %s713_s0  ;;  %p719_p7 = scmp.lt.s32.totalorder %s713_s0, %s713_s0 }
  0x2f   :  { %p720_p8 = por %p719_p7, %p718_p6 }
  0x31   :  { %p721_p9 = pnand %p720_p8, %p714_p5 }
  0x33   :  { %724 = shalt.err (!%p721_p9)
}
  0x34   :  { %53 = dma.hbm_to_vmem [thread:$0]  %s956_s3, 1024, %s48_s28, [#allocation7], %s779_s13, %s779_s13, %s780_s14  }
  0x35   :  { %s725_s20 = scalar_lea.hbm %s958_s5, 1024 }
  0x36   :  { %p726_p10 = scmp.ne.s32.totalorder %s958_s5, %s725_s20  ;;  %p729_p11 = scmp.lt.u32.totalorder %s725_s20, %s958_s5 }
  0x38   :  { %p731_p12 = pnand %p729_p11, %p726_p10 }
  0x3a   :  { %734 = shalt.err (!%p731_p12)
}
  0x3b   :  { %s735_s1 = scalar_lea.vmem %s865_s30, 1024  ;;  %p740_p0 = scmp.lt.s32.totalorder %s865_s30, %s865_s30 }
  0x3c   :  { %p736_p13 = scmp.ne.s32.totalorder %s865_s30, %s735_s1  ;;  %p741_p1 = scmp.lt.s32.totalorder %s735_s1, %s735_s1 }
  0x3e   :  { %p742_p2 = por %p741_p1, %p740_p0 }
  0x40   :  { %p743_p3 = pnand %p742_p2, %p736_p13 }
  0x42   :  { %746 = shalt.err (!%p743_p3)
}
  0x43   :  { %67 = dma.hbm_to_vmem [thread:$0]  %s958_s5, 1024, %s865_s30, [#allocation10], %s779_s13, %s779_s13, %s780_s14  }
  0x44   :  { %769 = dma.done.wait [#allocation4], 128  }
  0x45   :  { %770 = vsyncadd [#allocation4], 4294967168 }
  0x46   :  { %771 = dma.done.wait [#allocation7], 2048  }
  0x47   :  { %772 = vsyncadd [#allocation7], 4294965248 }
  0x48   :  { %773 = dma.done.wait [#allocation10], 1024  }
  0x49   :  { %774 = vsyncadd [#allocation10], 4294966272  ;;  %v783_v0 = vmov 0.0   ;;  %vm784_vm0 = vmmov 0   ;;  %v626_v1 = vld [vmem:[#allocation6] sm:$0xff]   ;;  %v627_v2 = vld [vmem:[#allocation6 + $0x8] sm:$0xff]  }
  0x4a   :  { %555 = vmatprep.subr.bf16.mxu0 %v783_v0  ;;  %571 = vmatprep.mubr.msk.bf16.mxu0 %vm784_vm0, %v783_v0  ;;  %v628_v3 = vld [vmem:[#allocation6 + $0x10] sm:$0xff]   ;;  %v635_v4 = vld [vmem:[#allocation8] sm:$0xff]   ;;  %v629_v5 = vld [vmem:[#allocation6 + $0x18] sm:$0xff]  }
  0x4b   :  { %575 = vmatprep.subr.bf16.mxu1 %v783_v0  ;;  %591 = vmatprep.mubr.msk.bf16.mxu1 %vm784_vm0, %v783_v0  ;;  %v636_v6 = vld [vmem:[#allocation8 + $0x8] sm:$0xff]   ;;  %v630_v7 = vld [vmem:[#allocation6 + $0x20] sm:$0xff]   ;;  %v637_v8 = vld [vmem:[#allocation8 + $0x10] sm:$0xff]  }
  0x4c   :  { %556 = vmatpush3.bf16.msra.mxu0 %v626_v1  ;;  %576 = vmatpush3.bf16.msra.mxu1 %v635_v4  ;;  %v631_v9 = vld [vmem:[#allocation6 + $0x28] sm:$0xff]   ;;  %v638_v10 = vld [vmem:[#allocation8 + $0x18] sm:$0xff]   ;;  %v632_v11 = vld [vmem:[#allocation6 + $0x30] sm:$0xff]  }
  0x4d   :  { %557 = vmatprep.subr.bf16.mxu0 %v783_v0  ;;  %577 = vmatprep.subr.bf16.mxu1 %v783_v0  ;;  %v639_v12 = vld [vmem:[#allocation8 + $0x20] sm:$0xff]   ;;  %v633_v13 = vld [vmem:[#allocation6 + $0x38] sm:$0xff]   ;;  %v640_v14 = vld [vmem:[#allocation8 + $0x28] sm:$0xff]  }
  0x4e   :  { %v634_v15 = vld [vmem:[#allocation3] sm:$0xff]   ;;  %v641_v16 = vld [vmem:[#allocation8 + $0x30] sm:$0xff]   ;;  %v643_v18 = vld [vmem:[#allocation9] sm:$0xff]  }
  0x4f   :  { %v642_v17 = vld [vmem:[#allocation8 + $0x38] sm:$0xff]   ;;  %v644_v19 = vld [vmem:[#allocation9 + $0x8] sm:$0xff]   ;;  %v645_v20 = vld [vmem:[#allocation9 + $0x10] sm:$0xff]  }
  0x50   :  { %558 = vmatpush3.bf16.msra.mxu0 %v627_v2  ;;  %578 = vmatpush3.bf16.msra.mxu1 %v636_v6  ;;  %v646_v21 = vld [vmem:[#allocation9 + $0x18] sm:$0xff]   ;;  %v647_v22 = vld [vmem:[#allocation9 + $0x20] sm:$0xff]   ;;  %v648_v23 = vld [vmem:[#allocation9 + $0x28] sm:$0xff]  }
  0x51   :  { %559 = vmatprep.subr.bf16.mxu0 %v783_v0  ;;  %579 = vmatprep.subr.bf16.mxu1 %v783_v0  ;;  %v509_v24 = vld [vmem:[%s955_s2] ss:$0 sm:$0xff]  ;;  %v649_v34 = vld [vmem:[#allocation9 + $0x30] sm:$0xff]  }
  0x52   :  { %v650_v35 = vld [vmem:[#allocation9 + $0x38] sm:$0xff]  }
  0x53   :  { %v510_v36 = vld [vmem:[%s957_s4] ss:$0 sm:$0xff]  ;;  %s785_s4 = smov [#allocation11]  }
  0x54   :  { %560 = vmatpush3.bf16.msra.mxu0 %v628_v3  ;;  %580 = vmatpush3.bf16.msra.mxu1 %v637_v8  ;;  %v519_v46 = vld [vmem:[%s959_s6] ss:$0 sm:$0xff]  ;;  %s484_s6 = sshll.u32 %s785_s4, 4  ;;  %s485_s6 = int_to_ptr.vmem [resolvable:$true] %s484_s6 }
  0x55   :  { %561 = vmatprep.subr.bf16.mxu0 %v783_v0  ;;  %581 = vmatprep.subr.bf16.mxu1 %v783_v0  ;;  %s747_s29 = scalar_lea.vmem %s485_s6, 256  ;;  %p752_p5 = scmp.lt.s32.totalorder %s485_s6, %s485_s6 }
  0x56   :  { %p748_p4 = scmp.ne.s32.totalorder %s485_s6, %s747_s29  ;;  %p753_p6 = scmp.lt.s32.totalorder %s747_s29, %s747_s29 }
  0x58   :  { %562 = vmatpush3.bf16.msra.mxu0 %v629_v5  ;;  %582 = vmatpush3.bf16.msra.mxu1 %v638_v10  ;;  %p754_p7 = por %p753_p6, %p752_p5 }
  0x59   :  { %563 = vmatprep.subr.bf16.mxu0 %v783_v0  ;;  %583 = vmatprep.subr.bf16.mxu1 %v783_v0 }
  0x5a   :  { %p755_p8 = pnand %p754_p7, %p748_p4 }
  0x5c   :  { %564 = vmatpush3.bf16.msra.mxu0 %v630_v7  ;;  %584 = vmatpush3.bf16.msra.mxu1 %v639_v12 }
  0x5d   :  { %565 = vmatprep.subr.bf16.mxu0 %v783_v0  ;;  %585 = vmatprep.subr.bf16.mxu1 %v783_v0 }
  0x60   :  { %566 = vmatpush3.bf16.msra.mxu0 %v631_v9  ;;  %586 = vmatpush3.bf16.msra.mxu1 %v640_v14 }
  0x61   :  { %567 = vmatprep.subr.bf16.mxu0 %v783_v0  ;;  %587 = vmatprep.subr.bf16.mxu1 %v783_v0 }
  0x64   :  { %568 = vmatpush3.bf16.msra.mxu0 %v632_v11  ;;  %588 = vmatpush3.bf16.msra.mxu1 %v641_v16 }
  0x65   :  { %569 = vmatprep.subr.bf16.mxu0 %v783_v0  ;;  %589 = vmatprep.subr.bf16.mxu1 %v783_v0 }
  0x68   :  { %570 = vmatpush3.bf16.msra.mxu0 %v633_v13  ;;  %590 = vmatpush3.bf16.msra.mxu1 %v642_v17 }
  0x69   :  { %595 = vmatprep.subr.bf16.mxu0 %v783_v0 }
  0x6b   :  { %572 = vmatmul.mubr.bf16.vlgmr.msra.gmra.mrb[0].mxu0 %v634_v15 }
  0x6c   :  { %611 = vmatprep.mubr.msk.bf16.mxu0 %vm784_vm0, %v783_v0  ;;  %596 = vmatpush3.bf16.msra.mxu0 %v643_v18 }
  0x6d   :  { %597 = vmatprep.subr.bf16.mxu0 %v783_v0 }
  0x70   :  { %598 = vmatpush3.bf16.msra.mxu0 %v644_v19 }
  0x71   :  { %599 = vmatprep.subr.bf16.mxu0 %v783_v0 }
  0x74   :  { %600 = vmatpush3.bf16.msra.mxu0 %v645_v20 }
  0x75   :  { %601 = vmatprep.subr.bf16.mxu0 %v783_v0 }
  0x78   :  { %602 = vmatpush3.bf16.msra.mxu0 %v646_v21 }
  0x79   :  { %603 = vmatprep.subr.bf16.mxu0 %v783_v0 }
  0x7c   :  { %604 = vmatpush3.bf16.msra.mxu0 %v647_v22 }
  0x7d   :  { %605 = vmatprep.subr.bf16.mxu0 %v783_v0 }
  0x80   :  { %606 = vmatpush3.bf16.msra.mxu0 %v648_v23 }
  0x81   :  { %607 = vmatprep.subr.bf16.mxu0 %v783_v0 }
  0x84   :  { %608 = vmatpush3.bf16.msra.mxu0 %v649_v34 }
  0x85   :  { %609 = vmatprep.subr.bf16.mxu0 %v783_v0 }
  0x88   :  { %610 = vmatpush3.bf16.msra.mxu0 %v650_v35 }
 0x13e   :  { %v202_v25 = vpop.f32.mrb[0].mxu0 }
 0x13f   :  { %v225_v26 = vadd.f32 %v509_v24, %v202_v25  ;;  %v573_v27 = vpop.f32.mrb[1].mxu0 }
 0x140   :  { %v205_v28 = vpop.f32.mrb[2].mxu0 }
 0x141   :  { %v226_v29 = vadd.f32 %v509_v24, %v205_v28  ;;  %v574_v30 = vpop.f32.mrb[3].mxu0  ;;  %v227_v31 = vmax.f32 %v225_v26, 0.0 }
 0x143   :  { %v228_v32 = vmax.f32 %v226_v29, 0.0 }
 0x145   :  { %v229_v33 = vpack.c.bf16 %v228_v32, %v227_v31 }
 0x147   :  { %592 = vmatmul.mubr.bf16.vlgmr.msra.gmra.mrb[0].mxu1 %v229_v33 }
 0x21a   :  { %v335_v37 = vpop.f32.mrb[0].mxu1 }
 0x21b   :  { %v336_v38 = vadd.f32 %v510_v36, %v335_v37  ;;  %v593_v39 = vpop.f32.mrb[1].mxu1 }
 0x21c   :  { %v338_v40 = vpop.f32.mrb[2].mxu1 }
 0x21d   :  { %v339_v41 = vadd.f32 %v510_v36, %v338_v40  ;;  %v594_v42 = vpop.f32.mrb[3].mxu1  ;;  %v342_v43 = vmax.f32 %v336_v38, 0.0 }
 0x21f   :  { %v343_v44 = vmax.f32 %v339_v41, 0.0 }
 0x221   :  { %v344_v45 = vpack.c.bf16 %v343_v44, %v342_v43 }
 0x223   :  { %612 = vmatmul.mubr.bf16.vlgmr.msra.gmra.mrb[4].mxu0 %v344_v45 }
 0x2f6   :  { %v450_v47 = vpop.f32.mrb[4].mxu0 }
 0x2f7   :  { %v451_v48 = vadd.f32 %v519_v46, %v450_v47  ;;  %v613_v49 = vpop.f32.mrb[5].mxu0 }
 0x2f8   :  { %v453_v50 = vpop.f32.mrb[6].mxu0 }
 0x2f9   :  { %457 = vmax.xlane.f32.xlu0 %v451_v48  ;;  %v614_v51 = vpop.f32.mrb[7].mxu0  ;;  %v454_v52 = vadd.f32 %v519_v46, %v453_v50 }
 0x2fd   :  { %459 = vmax.xlane.f32.xlu0 %v454_v52 }
 0x386   :  { %v458_v53 = vpop.xlane.xlu0 %457 }
 0x387   :  { %v461_v54 = vsub.f32 %v451_v48, %v458_v53 }
 0x389   :  { %v463_v55 = vmul.f32 1.442695, %v461_v54 }
 0x38a   :  { %v460_v56 = vpop.xlane.xlu0 %459 }
 0x38b   :  { %v462_v57 = vsub.f32 %v454_v52, %v460_v56  ;;  %651 = vpow2.f32 %v463_v55 }
 0x38d   :  { %v465_v58 = vmul.f32 1.442695, %v462_v57 }
 0x38f   :  { %653 = vpow2.f32 %v465_v58 }
 0x395   :  { %v652_v59 = vpop.eup %651 }
 0x396   :  { %467 = vadd.xlane.f32.xlu1 %v652_v59 }
 0x399   :  { %v654_v60 = vpop.eup %653 }
 0x39a   :  { %469 = vadd.xlane.f32.xlu1 %v654_v60 }
 0x423   :  { %v468_v61 = vpop.xlane.xlu1 %467 }
 0x424   :  { %655 = vlog2.f32 %v468_v61 }
 0x427   :  { %v470_v62 = vpop.xlane.xlu1 %469 }
 0x428   :  { %657 = vlog2.f32 %v470_v62 }
 0x42e   :  { %v656_v63 = vpop.eup %655 }
 0x42f   :  { %v472_v0 = vmul.f32 0.6931472, %v656_v63 }
 0x431   :  { %v475_v1 = vsub.f32 %v461_v54, %v472_v0 }
 0x432   :  { %v658_v2 = vpop.eup %657 }
 0x433   :  { %477 = vst [vmem:[#allocation11] sm:$0xff] %v475_v1  ;;  %v474_v3 = vmul.f32 0.6931472, %v658_v2 }
 0x435   :  { %v476_v4 = vsub.f32 %v462_v57, %v474_v3 }
 0x437   :  { %478 = vst [vmem:[#allocation11 + $0x8] sm:$0xff] %v476_v4 }
 0x438   :  { %758 = shalt.err (!%p755_p8)
}
 0x439   :  { %s759_s9 = scalar_lea.hbm %s960_s7, 256 }
 0x43a   :  { %p760_p9 = scmp.ne.s32.totalorder %s960_s7, %s759_s9  ;;  %p763_p10 = scmp.lt.u32.totalorder %s759_s9, %s960_s7 }
 0x43c   :  { %p765_p11 = pnand %p763_p10, %p760_p9 }
 0x43e   :  { %768 = shalt.err (!%p765_p11)
}
 0x43f   :  { %s786_s16 = smov 128   ;;  %s787_s0 = smov 8  }
 0x440   :  { %490 = dma.vmem_to_hbm [thread:$0]  %s485_s6, 256, %s960_s7, [#allocation5], %s786_s16, %s786_s16, %s787_s0  }
 0x441   :  { %775 = dma.done.wait [#allocation5], 256  }
 0x442   :  { %776 = vsyncadd [#allocation5], 4294967040 }
 0x443   :  { %494 = vsyncpa [#allocation4], 1 }
 0x444   :  { %495 = vsyncpa [#allocation7], 1 }
 0x445   :  { %496 = vsyncpa [#allocation10], 1 }
 0x446   :  { %497 = vsyncpa [#allocation5], 1 }

</bundles_post_ra>
